<compile_context>
chip_gen: v7x
topology: tpu7x:2x2x1
jax: 0.10.0
libtpu: 0.0.40
codegen_flags: <defaults>
</compile_context>

<pallas_src>
import functools

import jax
import jax.numpy as jnp
from jax.experimental import pallas as pl
from jax.experimental.pallas import tpu as pltpu

_LANE = 128      # lane width (last dim)
_SUBLANE = 8     # f32 sublane height (second-to-last dim)


def _round_up(n: int, m: int) -> int:
    return ((n + m - 1) // m) * m


def _apply_activation(v, name: str):
    if name == "relu":
        return jnp.maximum(v, 0)
    if name == "tanh":
        return jnp.tanh(v)
    if name == "leaky_relu":
        return jnp.where(v >= 0, v, v * jnp.asarray(0.01, v.dtype))
    if name == "gelu":
        return jax.nn.gelu(v)
    return jnp.maximum(v, 0)   # same default as the torch module


def _actor_kernel(*refs, num_hidden: int, activation: str, act_dtype):
    # refs = (x, W0, b0, ..., W_out, b_out, scale, out)
    x_ref = refs[0]
    wb = refs[1:1 + 2 * (num_hidden + 1)]
    scale_ref = refs[-2]      # (2, action_dim): row 0 = half_range, row 1 = mid
    out_ref = refs[-1]

    h = x_ref[...]            # caller dtype; cast to weight dtype at the MXU

    # Hidden layers: MXU matmul with f32 accumulation, bias add in f32,
    # activation applied in act_dtype (f32 = v5e-safe, bf16 = v6e/v7x fast).
    for i in range(num_hidden):
        w = wb[2 * i][...]
        b = wb[2 * i + 1][...]                      # f32 [1, out_pad]
        z = jnp.dot(h.astype(w.dtype), w, preferred_element_type=jnp.float32) + b
        h = _apply_activation(z.astype(act_dtype), activation)

    # Output layer (true action_dim width) + tanh + single-FMA rescale.
    w_o = wb[2 * num_hidden][...]
    b_o = wb[2 * num_hidden + 1][...]
    z = jnp.dot(h.astype(w_o.dtype), w_o, preferred_element_type=jnp.float32) + b_o
    raw = jnp.tanh(z)                               # f32
    out_ref[...] = (raw * scale_ref[0:1, :] + scale_ref[1:2, :]).astype(out_ref.dtype)


def prepare_actor_params(params, action_low, action_high,
                         compute_dtype=jnp.bfloat16):
    """Pad / cast every grid-invariant operand ONCE. Cache and reuse the result
    across forward calls so the launch does no per-call weight copies.

    params: list of (W[in, out], b[out]) for hidden layers + output layer.
    Zero lane-padding is exact: padded columns have zero weights/bias and feed
    zero-padded weight rows in the next layer.
    """
    num_hidden = len(params) - 1
    state_dim = params[0][0].shape[0]
    action_dim = params[-1][0].shape[1]

    # K of layer 0 = true state_dim (matches the unpadded streamed x);
    # hidden widths padded to 128 lanes; N of the output layer = true
    # action_dim (kernel writes the real output, no post-slice).
    hidden_pad = [_round_up(w.shape[1], _LANE) for (w, _) in params[:-1]]
    in_dims = [state_dim] + hidden_pad
    out_dims = hidden_pad + [action_dim]

    weights, biases = [], []
    for (w, b), dip, dop in zip(params, in_dims, out_dims):
        din, dout = w.shape
        w_p = jnp.zeros((dip, dop), compute_dtype).at[:din, :dout].set(
            w.astype(compute_dtype))
        b_p = jnp.zeros((1, dop), jnp.float32).at[0, :dout].set(
            b.astype(jnp.float32))
        weights.append(w_p)
        biases.append(b_p)

    low = jnp.asarray(action_low, jnp.float32).reshape(-1)
    high = jnp.asarray(action_high, jnp.float32).reshape(-1)
    half = 0.5 * (high - low)
    mid = low + half                      # out = raw * half + mid
    scale = jnp.stack([half, mid], axis=0)          # (2, action_dim)

    return {"weights": weights, "biases": biases, "scale": scale,
            "state_dim": state_dim, "action_dim": action_dim,
            "num_hidden": num_hidden}


def actor_forward(x, prepped, *, activation="relu", tile_b=None, max_tile_b=2048,
                  out_dtype=jnp.float32, bf16_activations=False,
                  single_buffer_weights=True):
    """x: [B, state_dim] float. Returns [B, action_dim] in out_dtype."""
    B, state_dim = x.shape
    assert state_dim == prepped["state_dim"]
    action_dim = prepped["action_dim"]
    num_hidden = prepped["num_hidden"]
    weights, biases, scale = prepped["weights"], prepped["biases"], prepped["scale"]

    # Batch tile: big (amortizes ~0.35us/grid-step), multiple of 8 sublanes,
    # chosen so the Pallas-masked last block has minimal wasted rows.
    if tile_b is None:
        n_tiles = max(1, -(-B // max_tile_b))            # cdiv(B, max_tile_b)
        tile_b = _round_up(-(-B // n_tiles), _SUBLANE)   # round_up(cdiv, 8)
    tile_b = max(_SUBLANE, min(_round_up(int(tile_b), _SUBLANE),
                               _round_up(B, _SUBLANE)))
    grid = (pl.cdiv(B, tile_b),)

    act_dtype = jnp.bfloat16 if bf16_activations else jnp.float32

    flat_args = [x] + [a for wb in zip(weights, biases) for a in wb] + [scale]

    # Advisory cost estimate so XLA schedules neighbours sensibly.
    flops = 2 * B * sum(int(w.shape[0]) * int(w.shape[1]) for w in weights)
    transcendentals = B * action_dim
    if activation in ("tanh", "gelu"):
        transcendentals += B * sum(int(w.shape[1]) for w in weights[:-1])
    bytes_accessed = (int(x.size) * x.dtype.itemsize
                      + sum(int(a.size) * a.dtype.itemsize for a in flat_args[1:])
                      + B * action_dim * jnp.dtype(out_dtype).itemsize)
    cost = pl.CostEstimate(flops=int(flops), transcendentals=int(transcendentals),
                           bytes_accessed=int(bytes_accessed))

    # VMEM budget: resident weights (x2 worst case) + double-buffered x/out
    # tiles + headroom. Stays within v7x's 64 MiB per-TC ceiling.
    def _vmem_tile(rows, cols, dtype):
        return _round_up(int(rows), _SUBLANE) * _round_up(int(cols), _LANE) \
            * jnp.dtype(dtype).itemsize
    resident = sum(_vmem_tile(a.shape[0], a.shape[1], a.dtype) for a in flat_args[1:])
    streamed = 2 * (_vmem_tile(tile_b, state_dim, x.dtype)
                    + _vmem_tile(tile_b, action_dim, out_dtype))
    vmem_limit = int(min(100 * 2**20,
                         max(32 * 2**20, 2 * resident + streamed + 4 * 2**20)))

    kernel = functools.partial(_actor_kernel, num_hidden=num_hidden,
                               activation=activation, act_dtype=act_dtype)

    def _run(single_buffer):
        def resident_spec(shape):
            kwargs = {}
            if single_buffer:
                # Grid-invariant operand: one buffer is enough (halves the
                # resident VMEM -- matters on v7x's 64 MiB per-TC VMEM).
                kwargs["pipeline_mode"] = pl.Buffered(1)
            return pl.BlockSpec(shape, lambda i: (0, 0), **kwargs)

        in_specs = [pl.BlockSpec((tile_b, state_dim), lambda i: (i, 0))]  # streamed
        for w_p, b_p in zip(weights, biases):
            in_specs.append(resident_spec(w_p.shape))
            in_specs.append(resident_spec(b_p.shape))
        in_specs.append(resident_spec(scale.shape))

        return pl.pallas_call(
            kernel,
            out_shape=jax.ShapeDtypeStruct((B, action_dim), out_dtype),
            grid=grid,
            in_specs=in_specs,
            out_specs=pl.BlockSpec((tile_b, action_dim), lambda i: (i, 0)),
            compiler_params=pltpu.CompilerParams(
                dimension_semantics=("parallel",),       # megacore on v7x
                vmem_limit_bytes=vmem_limit),
            cost_estimate=cost,
        )(*flat_args)

    if single_buffer_weights:
        try:
            out = _run(True)
            jax.block_until_ready(out)   # surface any lowering issue here
            return out
        except Exception:
            pass  # pl.Buffered(1) unsupported by this jax build -> default path
    return _run(False)


def init_params(key, state_dim, hidden_units, action_dim):
    """torch.nn.Linear-style init (uniform +/- 1/sqrt(fan_in)); W stored [in, out]."""
    dims = [state_dim] + list(hidden_units) + [action_dim]
    params = []
    for i in range(len(dims) - 1):
        fan_in, fan_out = dims[i], dims[i + 1]
        key, kw, kb = jax.random.split(key, 3)
        bound = 1.0 / (fan_in ** 0.5)
        w = jax.random.uniform(kw, (fan_in, fan_out), jnp.float32, -bound, bound)
        b = jax.random.uniform(kb, (fan_out,), jnp.float32, -bound, bound)
        params.append((w, b))
    return params


if __name__ == "__main__":
    key = jax.random.PRNGKey(0)

    # Small shapes consistent with the module (plain MLP on state vectors).
    batch = 8
    state_dim = 16
    hidden_units = [32, 32]   # stands in for DDPG_CONFIG['actor_hidden_units']
    action_dim = 8

    key, kx = jax.random.split(key)
    x = jax.random.normal(kx, (batch, state_dim), jnp.float32)
    params = init_params(key, state_dim, hidden_units, action_dim)

    action_low = -2.0 * jnp.ones((action_dim,), jnp.float32)
    action_high = 2.0 * jnp.ones((action_dim,), jnp.float32)

    # Pure-JAX reference of the exact forward semantics.
    h = x
    for (w, b) in params[:-1]:
        h = jnp.maximum(h @ w + b, 0.0)
    raw = jnp.tanh(h @ params[-1][0] + params[-1][1])
    ref = 0.5 * (raw + 1.0) * (action_high - action_low) + action_low

    # 1) exact path: f32 weights, f32 activations.
    prepped_f32 = prepare_actor_params(params, action_low, action_high,
                                       compute_dtype=jnp.float32)
    out_f32 = jax.block_until_ready(actor_forward(x, prepped_f32, activation="relu"))
    assert out_f32.shape == (batch, action_dim)
    assert jnp.allclose(out_f32, ref, atol=1e-5, rtol=1e-5)

    # 2) fast path: bf16 weights on the MXU (f32 accumulation), f32 activations
    #    (safe on v5e which has no bf16 VPU/EUP).
    prepped_bf16 = prepare_actor_params(params, action_low, action_high,
                                        compute_dtype=jnp.bfloat16)
    out_bf16 = jax.block_until_ready(actor_forward(x, prepped_bf16, activation="relu"))
    assert out_bf16.shape == (batch, action_dim)
    assert jnp.allclose(out_bf16, ref, atol=5e-2, rtol=5e-2)

    # 3) fastest path for v6e/v7x: bf16 weights AND bf16 inter-layer activations.
    out_bf16_act = jax.block_until_ready(
        actor_forward(x, prepped_bf16, activation="relu", bf16_activations=True))
    assert out_bf16_act.shape == (batch, action_dim)
    assert jnp.allclose(out_bf16_act, ref, atol=1e-1, rtol=1e-1)

    print("KERNEL_OK")
</pallas_src>

<mosaic_0001>
module attributes {stable_mosaic.version = 11 : i64} {
  func.func @_actor_kernel(%arg0: i32, %arg1: memref<8x16xf32, #tpu.memory_space<vmem>>, %arg2: memref<16x128xf32, #tpu.memory_space<vmem>>, %arg3: memref<1x128xf32, #tpu.memory_space<vmem>>, %arg4: memref<128x128xf32, #tpu.memory_space<vmem>>, %arg5: memref<1x128xf32, #tpu.memory_space<vmem>>, %arg6: memref<128x8xf32, #tpu.memory_space<vmem>>, %arg7: memref<1x8xf32, #tpu.memory_space<vmem>>, %arg8: memref<2x8xf32, #tpu.memory_space<vmem>>, %arg9: memref<8x8xf32, #tpu.memory_space<vmem>>) attributes {dimension_semantics = [#tpu.dimension_semantics<parallel>], iteration_bounds = array<i64: 1>, scalar_prefetch = 0 : i64, scratch_operands = 0 : i64, tpu.core_type = #tpu.core_type<tc>, window_params = [{transform_indices = @transform_0, window_bounds = array<i64: 8, 16>}, {pipeline_mode = #tpu.pipeline_mode<synchronous>, transform_indices = @transform_1, window_bounds = array<i64: 16, 128>}, {pipeline_mode = #tpu.pipeline_mode<synchronous>, transform_indices = @transform_2, window_bounds = array<i64: 1, 128>}, {pipeline_mode = #tpu.pipeline_mode<synchronous>, transform_indices = @transform_3, window_bounds = array<i64: 128, 128>}, {pipeline_mode = #tpu.pipeline_mode<synchronous>, transform_indices = @transform_4, window_bounds = array<i64: 1, 128>}, {pipeline_mode = #tpu.pipeline_mode<synchronous>, transform_indices = @transform_5, window_bounds = array<i64: 128, 8>}, {pipeline_mode = #tpu.pipeline_mode<synchronous>, transform_indices = @transform_6, window_bounds = array<i64: 1, 8>}, {pipeline_mode = #tpu.pipeline_mode<synchronous>, transform_indices = @transform_7, window_bounds = array<i64: 2, 8>}, {transform_indices = @transform_8, window_bounds = array<i64: 8, 8>}]} {
    %c0 = arith.constant 0 : index
    %c0_0 = arith.constant 0 : index
    %0 = vector.load %arg1[%c0, %c0_0] : memref<8x16xf32, #tpu.memory_space<vmem>>, vector<8x16xf32>
    %c0_1 = arith.constant 0 : index
    %c0_2 = arith.constant 0 : index
    %1 = vector.load %arg2[%c0_1, %c0_2] : memref<16x128xf32, #tpu.memory_space<vmem>>, vector<16x128xf32>
    %c0_3 = arith.constant 0 : index
    %c0_4 = arith.constant 0 : index
    %2 = vector.load %arg3[%c0_3, %c0_4] : memref<1x128xf32, #tpu.memory_space<vmem>>, vector<1x128xf32>
    %cst = arith.constant dense<0.000000e+00> : vector<8x128xf32>
    %3 = tpu.matmul %0, %1, %cst {dimension_numbers = #tpu.dot_dimension_numbers<[1], [0], [0], [1], [0, 0, 1, 1], [], []>} : vector<8x16xf32>, vector<16x128xf32>, vector<8x128xf32> -> vector<8x128xf32>
    %4 = vector.broadcast %2 : vector<1x128xf32> to vector<8x128xf32>
    %5 = arith.addf %3, %4 : vector<8x128xf32>
    %cst_5 = arith.constant 0.000000e+00 : f32
    %6 = vector.broadcast %cst_5 : f32 to vector<8x128xf32>
    %7 = arith.maximumf %5, %6 : vector<8x128xf32>
    %c0_6 = arith.constant 0 : index
    %c0_7 = arith.constant 0 : index
    %8 = vector.load %arg4[%c0_6, %c0_7] : memref<128x128xf32, #tpu.memory_space<vmem>>, vector<128x128xf32>
    %c0_8 = arith.constant 0 : index
    %c0_9 = arith.constant 0 : index
    %9 = vector.load %arg5[%c0_8, %c0_9] : memref<1x128xf32, #tpu.memory_space<vmem>>, vector<1x128xf32>
    %cst_10 = arith.constant dense<0.000000e+00> : vector<8x128xf32>
    %10 = tpu.matmul %7, %8, %cst_10 {dimension_numbers = #tpu.dot_dimension_numbers<[1], [0], [0], [1], [0, 0, 1, 1], [], []>} : vector<8x128xf32>, vector<128x128xf32>, vector<8x128xf32> -> vector<8x128xf32>
    %11 = vector.broadcast %9 : vector<1x128xf32> to vector<8x128xf32>
    %12 = arith.addf %10, %11 : vector<8x128xf32>
    %cst_11 = arith.constant 0.000000e+00 : f32
    %13 = vector.broadcast %cst_11 : f32 to vector<8x128xf32>
    %14 = arith.maximumf %12, %13 : vector<8x128xf32>
    %c0_12 = arith.constant 0 : index
    %c0_13 = arith.constant 0 : index
    %15 = vector.load %arg6[%c0_12, %c0_13] : memref<128x8xf32, #tpu.memory_space<vmem>>, vector<128x8xf32>
    %c0_14 = arith.constant 0 : index
    %c0_15 = arith.constant 0 : index
    %16 = vector.load %arg7[%c0_14, %c0_15] : memref<1x8xf32, #tpu.memory_space<vmem>>, vector<1x8xf32>
    %cst_16 = arith.constant dense<0.000000e+00> : vector<8x8xf32>
    %17 = tpu.matmul %14, %15, %cst_16 {dimension_numbers = #tpu.dot_dimension_numbers<[1], [0], [0], [1], [0, 0, 1, 1], [], []>} : vector<8x128xf32>, vector<128x8xf32>, vector<8x8xf32> -> vector<8x8xf32>
    %18 = vector.broadcast %16 : vector<1x8xf32> to vector<8x8xf32>
    %19 = arith.addf %17, %18 : vector<8x8xf32>
    %20 = math.tanh %19 : vector<8x8xf32>
    %c0_17 = arith.constant 0 : index
    %c0_18 = arith.constant 0 : index
    %21 = vector.load %arg8[%c0_17, %c0_18] : memref<2x8xf32, #tpu.memory_space<vmem>>, vector<1x8xf32>
    %22 = vector.broadcast %21 : vector<1x8xf32> to vector<8x8xf32>
    %23 = arith.mulf %20, %22 : vector<8x8xf32>
    %c1 = arith.constant 1 : index
    %c0_19 = arith.constant 0 : index
    %24 = vector.load %arg8[%c1, %c0_19] : memref<2x8xf32, #tpu.memory_space<vmem>>, vector<1x8xf32>
    %25 = vector.broadcast %24 : vector<1x8xf32> to vector<8x8xf32>
    %26 = arith.addf %23, %25 : vector<8x8xf32>
    %c0_20 = arith.constant 0 : index
    %c0_21 = arith.constant 0 : index
    %27 = vector.load %arg9[%c0_20, %c0_21] : memref<8x8xf32, #tpu.memory_space<vmem>>, vector<8x8xf32>
    tpu.vector_store %arg9[%c0_20, %c0_21], %26 {strides = array<i32>} : memref<8x8xf32, #tpu.memory_space<vmem>>, vector<8x8xf32>,
    return
  }
  func.func @transform_0(%arg0: i32) -> (i32, i32) {
    %c0_i32 = arith.constant 0 : i32
    %c0_i32_0 = arith.constant 0 : i32
    return %arg0, %c0_i32 : i32, i32
  }
  func.func @transform_1(%arg0: i32) -> (i32, i32) {
    %c0_i32 = arith.constant 0 : i32
    %c0_i32_0 = arith.constant 0 : i32
    %c0_i32_1 = arith.constant 0 : i32
    return %c0_i32, %c0_i32_0 : i32, i32
  }
  func.func @transform_2(%arg0: i32) -> (i32, i32) {
    %c0_i32 = arith.constant 0 : i32
    %c0_i32_0 = arith.constant 0 : i32
    %c0_i32_1 = arith.constant 0 : i32
    return %c0_i32, %c0_i32_0 : i32, i32
  }
  func.func @transform_3(%arg0: i32) -> (i32, i32) {
    %c0_i32 = arith.constant 0 : i32
    %c0_i32_0 = arith.constant 0 : i32
    %c0_i32_1 = arith.constant 0 : i32
    return %c0_i32, %c0_i32_0 : i32, i32
  }
  func.func @transform_4(%arg0: i32) -> (i32, i32) {
    %c0_i32 = arith.constant 0 : i32
    %c0_i32_0 = arith.constant 0 : i32
    %c0_i32_1 = arith.constant 0 : i32
    return %c0_i32, %c0_i32_0 : i32, i32
  }
  func.func @transform_5(%arg0: i32) -> (i32, i32) {
    %c0_i32 = arith.constant 0 : i32
    %c0_i32_0 = arith.constant 0 : i32
    %c0_i32_1 = arith.constant 0 : i32
    return %c0_i32, %c0_i32_0 : i32, i32
  }
  func.func @transform_6(%arg0: i32) -> (i32, i32) {
    %c0_i32 = arith.constant 0 : i32
    %c0_i32_0 = arith.constant 0 : i32
    %c0_i32_1 = arith.constant 0 : i32
    return %c0_i32, %c0_i32_0 : i32, i32
  }
  func.func @transform_7(%arg0: i32) -> (i32, i32) {
    %c0_i32 = arith.constant 0 : i32
    %c0_i32_0 = arith.constant 0 : i32
    %c0_i32_1 = arith.constant 0 : i32
    return %c0_i32, %c0_i32_0 : i32, i32
  }
  func.func @transform_8(%arg0: i32) -> (i32, i32) {
    %c0_i32 = arith.constant 0 : i32
    %c0_i32_0 = arith.constant 0 : i32
    return %arg0, %c0_i32 : i32, i32
  }
}

module attributes {stable_mosaic.version = 11 : i64} {
  func.func @_actor_kernel(%arg0: i32, %arg1: memref<8x16xf32, #tpu.memory_space<vmem>>, %arg2: memref<16x128xf32, #tpu.memory_space<vmem>>, %arg3: memref<1x128xf32, #tpu.memory_space<vmem>>, %arg4: memref<128x128xf32, #tpu.memory_space<vmem>>, %arg5: memref<1x128xf32, #tpu.memory_space<vmem>>, %arg6: memref<128x8xf32, #tpu.memory_space<vmem>>, %arg7: memref<1x8xf32, #tpu.memory_space<vmem>>, %arg8: memref<2x8xf32, #tpu.memory_space<vmem>>, %arg9: memref<8x8xf32, #tpu.memory_space<vmem>>) attributes {dimension_semantics = [#tpu.dimension_semantics<parallel>], iteration_bounds = array<i64: 1>, scalar_prefetch = 0 : i64, scratch_operands = 0 : i64, tpu.core_type = #tpu.core_type<tc>, window_params = [{transform_indices = @transform_0, window_bounds = array<i64: 8, 16>}, {pipeline_mode = #tpu.pipeline_mode<synchronous>, transform_indices = @transform_1, window_bounds = array<i64: 16, 128>}, {pipeline_mode = #tpu.pipeline_mode<synchronous>, transform_indices = @transform_2, window_bounds = array<i64: 1, 128>}, {pipeline_mode = #tpu.pipeline_mode<synchronous>, transform_indices = @transform_3, window_bounds = array<i64: 128, 128>}, {pipeline_mode = #tpu.pipeline_mode<synchronous>, transform_indices = @transform_4, window_bounds = array<i64: 1, 128>}, {pipeline_mode = #tpu.pipeline_mode<synchronous>, transform_indices = @transform_5, window_bounds = array<i64: 128, 8>}, {pipeline_mode = #tpu.pipeline_mode<synchronous>, transform_indices = @transform_6, window_bounds = array<i64: 1, 8>}, {pipeline_mode = #tpu.pipeline_mode<synchronous>, transform_indices = @transform_7, window_bounds = array<i64: 2, 8>}, {transform_indices = @transform_8, window_bounds = array<i64: 8, 8>}]} {
    %c0 = arith.constant 0 : index
    %c0_0 = arith.constant 0 : index
    %0 = vector.load %arg1[%c0, %c0_0] : memref<8x16xf32, #tpu.memory_space<vmem>>, vector<8x16xf32>
    %c0_1 = arith.constant 0 : index
    %c0_2 = arith.constant 0 : index
    %1 = vector.load %arg2[%c0_1, %c0_2] : memref<16x128xf32, #tpu.memory_space<vmem>>, vector<16x128xf32>
    %c0_3 = arith.constant 0 : index
    %c0_4 = arith.constant 0 : index
    %2 = vector.load %arg3[%c0_3, %c0_4] : memref<1x128xf32, #tpu.memory_space<vmem>>, vector<1x128xf32>
    %cst = arith.constant dense<0.000000e+00> : vector<8x128xf32>
    %3 = tpu.matmul %0, %1, %cst {dimension_numbers = #tpu.dot_dimension_numbers<[1], [0], [0], [1], [0, 0, 1, 1], [], []>} : vector<8x16xf32>, vector<16x128xf32>, vector<8x128xf32> -> vector<8x128xf32>
    %4 = vector.broadcast %2 : vector<1x128xf32> to vector<8x128xf32>
    %5 = arith.addf %3, %4 : vector<8x128xf32>
    %cst_5 = arith.constant 0.000000e+00 : f32
    %6 = vector.broadcast %cst_5 : f32 to vector<8x128xf32>
    %7 = arith.maximumf %5, %6 : vector<8x128xf32>
    %c0_6 = arith.constant 0 : index
    %c0_7 = arith.constant 0 : index
    %8 = vector.load %arg4[%c0_6, %c0_7] : memref<128x128xf32, #tpu.memory_space<vmem>>, vector<128x128xf32>
    %c0_8 = arith.constant 0 : index
    %c0_9 = arith.constant 0 : index
    %9 = vector.load %arg5[%c0_8, %c0_9] : memref<1x128xf32, #tpu.memory_space<vmem>>, vector<1x128xf32>
    %cst_10 = arith.constant dense<0.000000e+00> : vector<8x128xf32>
    %10 = tpu.matmul %7, %8, %cst_10 {dimension_numbers = #tpu.dot_dimension_numbers<[1], [0], [0], [1], [0, 0, 1, 1], [], []>} : vector<8x128xf32>, vector<128x128xf32>, vector<8x128xf32> -> vector<8x128xf32>
    %11 = vector.broadcast %9 : vector<1x128xf32> to vector<8x128xf32>
    %12 = arith.addf %10, %11 : vector<8x128xf32>
    %cst_11 = arith.constant 0.000000e+00 : f32
    %13 = vector.broadcast %cst_11 : f32 to vector<8x128xf32>
    %14 = arith.maximumf %12, %13 : vector<8x128xf32>
    %c0_12 = arith.constant 0 : index
    %c0_13 = arith.constant 0 : index
    %15 = vector.load %arg6[%c0_12, %c0_13] : memref<128x8xf32, #tpu.memory_space<vmem>>, vector<128x8xf32>
    %c0_14 = arith.constant 0 : index
    %c0_15 = arith.constant 0 : index
    %16 = vector.load %arg7[%c0_14, %c0_15] : memref<1x8xf32, #tpu.memory_space<vmem>>, vector<1x8xf32>
    %cst_16 = arith.constant dense<0.000000e+00> : vector<8x8xf32>
    %17 = tpu.matmul %14, %15, %cst_16 {dimension_numbers = #tpu.dot_dimension_numbers<[1], [0], [0], [1], [0, 0, 1, 1], [], []>} : vector<8x128xf32>, vector<128x8xf32>, vector<8x8xf32> -> vector<8x8xf32>
    %18 = vector.broadcast %16 : vector<1x8xf32> to vector<8x8xf32>
    %19 = arith.addf %17, %18 : vector<8x8xf32>
    %20 = math.tanh %19 : vector<8x8xf32>
    %c0_17 = arith.constant 0 : index
    %c0_18 = arith.constant 0 : index
    %21 = vector.load %arg8[%c0_17, %c0_18] : memref<2x8xf32, #tpu.memory_space<vmem>>, vector<1x8xf32>
    %22 = vector.broadcast %21 : vector<1x8xf32> to vector<8x8xf32>
    %23 = arith.mulf %20, %22 : vector<8x8xf32>
    %c1 = arith.constant 1 : index
    %c0_19 = arith.constant 0 : index
    %24 = vector.load %arg8[%c1, %c0_19] : memref<2x8xf32, #tpu.memory_space<vmem>>, vector<1x8xf32>
    %25 = vector.broadcast %24 : vector<1x8xf32> to vector<8x8xf32>
    %26 = arith.addf %23, %25 : vector<8x8xf32>
    %c0_20 = arith.constant 0 : index
    %c0_21 = arith.constant 0 : index
    %27 = vector.load %arg9[%c0_20, %c0_21] : memref<8x8xf32, #tpu.memory_space<vmem>>, vector<8x8xf32>
    tpu.vector_store %arg9[%c0_20, %c0_21], %26 {strides = array<i32>} : memref<8x8xf32, #tpu.memory_space<vmem>>, vector<8x8xf32>,
    return
  }
  func.func @transform_0(%arg0: i32) -> (i32, i32) {
    %c0_i32 = arith.constant 0 : i32
    %c0_i32_0 = arith.constant 0 : i32
    return %arg0, %c0_i32 : i32, i32
  }
  func.func @transform_1(%arg0: i32) -> (i32, i32) {
    %c0_i32 = arith.constant 0 : i32
    %c0_i32_0 = arith.constant 0 : i32
    %c0_i32_1 = arith.constant 0 : i32
    return %c0_i32, %c0_i32_0 : i32, i32
  }
  func.func @transform_2(%arg0: i32) -> (i32, i32) {
    %c0_i32 = arith.constant 0 : i32
    %c0_i32_0 = arith.constant 0 : i32
    %c0_i32_1 = arith.constant 0 : i32
    return %c0_i32, %c0_i32_0 : i32, i32
  }
  func.func @transform_3(%arg0: i32) -> (i32, i32) {
    %c0_i32 = arith.constant 0 : i32
    %c0_i32_0 = arith.constant 0 : i32
    %c0_i32_1 = arith.constant 0 : i32
    return %c0_i32, %c0_i32_0 : i32, i32
  }
  func.func @transform_4(%arg0: i32) -> (i32, i32) {
    %c0_i32 = arith.constant 0 : i32
    %c0_i32_0 = arith.constant 0 : i32
    %c0_i32_1 = arith.constant 0 : i32
    return %c0_i32, %c0_i32_0 : i32, i32
  }
  func.func @transform_5(%arg0: i32) -> (i32, i32) {
    %c0_i32 = arith.constant 0 : i32
    %c0_i32_0 = arith.constant 0 : i32
    %c0_i32_1 = arith.constant 0 : i32
    return %c0_i32, %c0_i32_0 : i32, i32
  }
  func.func @transform_6(%arg0: i32) -> (i32, i32) {
    %c0_i32 = arith.constant 0 : i32
    %c0_i32_0 = arith.constant 0 : i32
    %c0_i32_1 = arith.constant 0 : i32
    return %c0_i32, %c0_i32_0 : i32, i32
  }
  func.func @transform_7(%arg0: i32) -> (i32, i32) {
    %c0_i32 = arith.constant 0 : i32
    %c0_i32_0 = arith.constant 0 : i32
    %c0_i32_1 = arith.constant 0 : i32
    return %c0_i32, %c0_i32_0 : i32, i32
  }
  func.func @transform_8(%arg0: i32) -> (i32, i32) {
    %c0_i32 = arith.constant 0 : i32
    %c0_i32_0 = arith.constant 0 : i32
    return %arg0, %c0_i32 : i32, i32
  }
}

</mosaic_0001>

<bundles_post_ra>
// kernel: tpu_custom_call.1
= control target key start
LH: loop header
LB: loop body
LE: loop exit
PB: predicated region body
PF: predicated region fallthrough
CT: control target
= control target key end

     0   :  { %13 = vsyncpa [#allocation3], 0  ;;  %s873_s0 = inlined_call_operand.hbm [shape: f32[8,16], index: 0, kind: input, shape index: {}]   ;;  %s874_s1 = inlined_call_operand.vmem [shape: f32[16,128], index: 1, kind: input, shape index: {}]   ;;  %s875_s2 = inlined_call_operand.hbm [shape: f32[1,128], index: 2, kind: input, shape index: {}]   ;;  %s876_s3 = inlined_call_operand.vmem [shape: f32[128,128], index: 3, kind: input, shape index: {}]   ;;  %s877_s4 = inlined_call_operand.hbm [shape: f32[1,128], index: 4, kind: input, shape index: {}]   ;;  %s878_s5 = inlined_call_operand.vmem [shape: f32[128,8], index: 5, kind: input, shape index: {}]   ;;  %s879_s6 = inlined_call_operand.vmem [shape: f32[1,8], index: 6, kind: input, shape index: {}]   ;;  %s880_s7 = inlined_call_operand.vmem [shape: f32[2,8], index: 7, kind: input, shape index: {}]   ;;  %s881_s8 = inlined_call_operand.hbm [shape: f32[8,8], index: 8, kind: output, shape index: {}]  }
   0x1   :  { %14 = vsyncpa [#allocation6], 0 }
   0x2   :  { %15 = vsyncpa [#allocation4], 0  ;;  %s642_s27 = smov [#allocation5]   ;;  %s643_s29 = smov [#allocation2]  }
   0x3   :  { %s34_s28 = sshll.u32 %s642_s27, 4  ;;  %s22_s30 = sshll.u32 %s643_s29, 4  ;;  %s35_s28 = int_to_ptr.vmem [resolvable:$true] %s34_s28  ;;  %s23_s30 = int_to_ptr.vmem [resolvable:$true] %s22_s30 }
   0x4   :  { %s548_s11 = scalar_lea.hbm %s875_s2, 16 }
   0x5   :  { %p549_p0 = scmp.ne.s32.totalorder %s875_s2, %s548_s11  ;;  %p552_p1 = scmp.lt.u32.totalorder %s548_s11, %s875_s2 }
   0x7   :  { %p554_p2 = pnand %p552_p1, %p549_p0 }
   0x9   :  { %557 = shalt.err (!%p554_p2)
}
   0xa   :  { %s558_s16 = scalar_lea.vmem %s35_s28, 16  ;;  %s562_s17 = scalar_lea.vmem %s35_s28, 32 }
   0xb   :  { %p559_p3 = scmp.ne.s32.totalorder %s35_s28, %s558_s16  ;;  %p563_p4 = scmp.lt.s32.totalorder %s35_s28, %s35_s28 }
   0xc   :  { %p564_p5 = scmp.lt.s32.totalorder %s562_s17, %s558_s16 }
   0xe   :  { %p565_p6 = por %p564_p5, %p563_p4 }
  0x10   :  { %p566_p7 = pnand %p565_p6, %p559_p3 }
  0x12   :  { %569 = shalt.err (!%p566_p7)
}
  0x13   :  { %37 = dma.hbm_to_vmem [thread:$0]  %s875_s2, 16, %s35_s28, [#allocation6]  }
  0x14   :  { %s570_s22 = scalar_lea.hbm %s873_s0, 128 }
  0x15   :  { %p571_p8 = scmp.ne.s32.totalorder %s873_s0, %s570_s22  ;;  %p574_p9 = scmp.lt.u32.totalorder %s570_s22, %s873_s0 }
  0x17   :  { %p576_p10 = pnand %p574_p9, %p571_p8 }
  0x19   :  { %579 = shalt.err (!%p576_p10)
}
  0x1a   :  { %s580_s27 = scalar_lea.vmem %s23_s30, 128  ;;  %p585_p12 = scmp.lt.s32.totalorder %s23_s30, %s23_s30 }
  0x1b   :  { %p581_p11 = scmp.ne.s32.totalorder %s23_s30, %s580_s27  ;;  %p586_p13 = scmp.lt.s32.totalorder %s580_s27, %s580_s27 }
  0x1d   :  { %p587_p0 = por %p586_p13, %p585_p12 }
  0x1f   :  { %p588_p1 = pnand %p587_p0, %p581_p11 }
  0x21   :  { %591 = shalt.err (!%p588_p1)
}
  0x22   :  { %25 = dma.hbm_to_vmem [thread:$0]  %s873_s0, 128, %s23_s30, [#allocation3]  }
  0x23   :  { %s644_s29 = smov [#allocation7]   ;;  %s592_s12 = scalar_lea.hbm %s877_s4, 16 }
  0x24   :  { %s46_s9 = sshll.u32 %s644_s29, 4  ;;  %p593_p2 = scmp.ne.s32.totalorder %s877_s4, %s592_s12  ;;  %s47_s9 = int_to_ptr.vmem [resolvable:$true] %s46_s9 }
  0x25   :  { %p596_p3 = scmp.lt.u32.totalorder %s592_s12, %s877_s4 }
  0x27   :  { %p598_p4 = pnand %p596_p3, %p593_p2 }
  0x29   :  { %601 = shalt.err (!%p598_p4)
}
  0x2a   :  { %s602_s17 = scalar_lea.vmem %s47_s9, 16  ;;  %s606_s0 = scalar_lea.vmem %s47_s9, 32 }
  0x2b   :  { %p603_p5 = scmp.ne.s32.totalorder %s47_s9, %s602_s17  ;;  %p607_p6 = scmp.lt.s32.totalorder %s47_s9, %s47_s9 }
  0x2c   :  { %p608_p7 = scmp.lt.s32.totalorder %s606_s0, %s602_s17 }
  0x2e   :  { %p609_p8 = por %p608_p7, %p607_p6 }
  0x30   :  { %p610_p9 = pnand %p609_p8, %p603_p5 }
  0x32   :  { %613 = shalt.err (!%p610_p9)
}
  0x33   :  { %49 = dma.hbm_to_vmem [thread:$0]  %s877_s4, 16, %s47_s9, [#allocation6]  }
  0x34   :  { %636 = dma.done.wait [#allocation3], 128  }
  0x35   :  { %637 = vsyncadd [#allocation3], 4294967168 }
  0x36   :  { %638 = dma.done.wait [#allocation6], 32  }
  0x37   :  { %639 = vsyncadd [#allocation6], 4294967264  ;;  %v645_v0 = vmov 0.0|0.0   ;;  %vm646_vm0 = vmmov 0   ;;  %v647_v1 = vmov 0.0   ;;  %v66_v2 = vld [vmem:[%s874_s1] sm:$0xff] }
  0x38   :  { %488 = vmatprep.subr.bf16.mxu0 %v645_v0  ;;  %415 = vmatprep.mubr.msk.f32.mxu0 %vm646_vm0, %v647_v1  ;;  %v67_v3 = vld [vmem:[%s874_s1 + $0x8] sm:$0xff]  ;;  %v150_v5 = vld [vmem:[%s876_s3] sm:$0xff]  ;;  %v152_v7 = vld [vmem:[%s876_s3 + $0x10] sm:$0xff]  ;;  %vm75_vm1 = vcmask 130048   ;;  %s648_s14 = smov [#allocation8]   ;;  %vm350_vm2 = vcmask 64512  }
  0x39   :  { %491 = vmatprep.subr.bf16.mxu1 %v645_v0  ;;  %450 = vmatprep.mubr.msk.f32.mxu1 %vm646_vm0, %v647_v1  ;;  %v489_v4 = vpack.c.bf16 %v67_v3, %v66_v2  ;;  %v151_v6 = vld [vmem:[%s876_s3 + $0x8] sm:$0xff]  ;;  %v153_v9 = vld [vmem:[%s876_s3 + $0x18] sm:$0xff]  ;;  %v65_v10 = vld [vmem:[#allocation2] sm:$0xff]  ;;  %s358_s15 = sshll.u32 %s648_s14, 4  ;;  %s359_s15 = int_to_ptr.vmem [resolvable:$true] %s358_s15 }
  0x3a   :  { %v492_v8 = vpack.c.bf16 %v151_v6, %v150_v5  ;;  %v495_v11 = vpack.c.bf16 %v153_v9, %v152_v7  ;;  %v154_v12 = vld [vmem:[%s876_s3 + $0x20] sm:$0xff]  ;;  %v155_v13 = vld [vmem:[%s876_s3 + $0x28] sm:$0xff]  ;;  %v156_v15 = vld [vmem:[%s876_s3 + $0x30] sm:$0xff]  ;;  %p619_p11 = scmp.lt.s32.totalorder %s359_s15, %s359_s15 }
  0x3b   :  { %490 = vmatpush3.bf16.msra.mxu0 %v489_v4  ;;  %v498_v14 = vpack.c.bf16 %v155_v13, %v154_v12  ;;  %v157_v16 = vld [vmem:[%s876_s3 + $0x38] sm:$0xff]  ;;  %v158_v18 = vld [vmem:[%s876_s3 + $0x40] sm:$0xff]  ;;  %v159_v19 = vld [vmem:[%s876_s3 + $0x48] sm:$0xff] }
  0x3c   :  { %493 = vmatpush3.bf16.msra.mxu1 %v492_v8  ;;  %515 = vmatprep.subr.bf16.mxu0 %v645_v0  ;;  %v501_v17 = vpack.c.bf16 %v157_v16, %v156_v15  ;;  %v504_v20 = vpack.c.bf16 %v159_v19, %v158_v18  ;;  %v160_v21 = vld [vmem:[%s876_s3 + $0x50] sm:$0xff]  ;;  %v161_v22 = vld [vmem:[%s876_s3 + $0x58] sm:$0xff]  ;;  %v162_v24 = vld [vmem:[%s876_s3 + $0x60] sm:$0xff] }
  0x3d   :  { %494 = vmatprep.subr.bf16.mxu1 %v645_v0  ;;  %v507_v23 = vpack.c.bf16 %v161_v22, %v160_v21  ;;  %v163_v25 = vld [vmem:[%s876_s3 + $0x68] sm:$0xff]  ;;  %v164_v27 = vld [vmem:[%s876_s3 + $0x70] sm:$0xff]  ;;  %v165_v28 = vld [vmem:[%s876_s3 + $0x78] sm:$0xff] }
  0x3e   :  { %416 = vmatmul.mubr.msk.f32.vlgmr.msra.gmra.mrb[0].mxu0 %vm75_vm1, %v65_v10  ;;  %v510_v26 = vpack.c.bf16 %v163_v25, %v162_v24  ;;  %v513_v29 = vpack.c.bf16 %v165_v28, %v164_v27  ;;  %v244_v30 = vld [vmem:[%s878_s5] sm:$0xff]  ;;  %v245_v31 = vld [vmem:[%s878_s5 + $0x8] sm:$0xff]  ;;  %v246_v32 = vld [vmem:[%s878_s5 + $0x10] sm:$0xff] }
  0x3f   :  { %485 = vmatprep.mubr.msk.f32.mxu0 %vm646_vm0, %v647_v1  ;;  %v516_v33 = vpack.c.bf16 %v245_v31, %v244_v30  ;;  %v247_v34 = vld [vmem:[%s878_s5 + $0x18] sm:$0xff]  ;;  %v248_v36 = vld [vmem:[%s878_s5 + $0x20] sm:$0xff]  ;;  %v249_v37 = vld [vmem:[%s878_s5 + $0x28] sm:$0xff] }
  0x40   :  { %496 = vmatpush3.bf16.msra.mxu1 %v495_v11  ;;  %v519_v35 = vpack.c.bf16 %v247_v34, %v246_v32  ;;  %v522_v38 = vpack.c.bf16 %v249_v37, %v248_v36  ;;  %v250_v39 = vld [vmem:[%s878_s5 + $0x30] sm:$0xff]  ;;  %v251_v40 = vld [vmem:[%s878_s5 + $0x38] sm:$0xff]  ;;  %v252_v42 = vld [vmem:[%s878_s5 + $0x40] sm:$0xff] }
  0x41   :  { %497 = vmatprep.subr.bf16.mxu1 %v645_v0  ;;  %517 = vmatpush3.bf16.msra.mxu0 %v516_v33  ;;  %v525_v41 = vpack.c.bf16 %v251_v40, %v250_v39  ;;  %v253_v43 = vld [vmem:[%s878_s5 + $0x48] sm:$0xff]  ;;  %v254_v45 = vld [vmem:[%s878_s5 + $0x50] sm:$0xff]  ;;  %v255_v46 = vld [vmem:[%s878_s5 + $0x58] sm:$0xff] }
  0x42   :  { %518 = vmatprep.subr.bf16.mxu0 %v645_v0  ;;  %v528_v44 = vpack.c.bf16 %v253_v43, %v252_v42  ;;  %v531_v47 = vpack.c.bf16 %v255_v46, %v254_v45  ;;  %v256_v48 = vld [vmem:[%s878_s5 + $0x60] sm:$0xff]  ;;  %v257_v49 = vld [vmem:[%s878_s5 + $0x68] sm:$0xff]  ;;  %v258_v56 = vld [vmem:[%s878_s5 + $0x70] sm:$0xff] }
  0x43   :  { %v534_v50 = vpack.c.bf16 %v257_v49, %v256_v48  ;;  %v368_v51 = vld [vmem:[#allocation5] ss:$0 sm:$0xff]  ;;  %v259_v57 = vld [vmem:[%s878_s5 + $0x78] sm:$0xff]  ;;  %v370_v59 = vld [vmem:[#allocation7] ss:$0 sm:$0xff] }
  0x44   :  { %499 = vmatpush3.bf16.msra.mxu1 %v498_v14  ;;  %v537_v58 = vpack.c.bf16 %v259_v57, %v258_v56  ;;  %v372_v4 = vld [vmem:[%s880_s7] ss:$0 sm:$0xff]  ;;  %v373_v6 = vld [vmem:[%s880_s7 + $0x1] ss:$0 sm:$0xff] }
  0x45   :  { %500 = vmatprep.subr.bf16.mxu1 %v645_v0  ;;  %520 = vmatpush3.bf16.msra.mxu0 %v519_v35 }
  0x46   :  { %521 = vmatprep.subr.bf16.mxu0 %v645_v0 }
  0x48   :  { %502 = vmatpush3.bf16.msra.mxu1 %v501_v17 }
  0x49   :  { %503 = vmatprep.subr.bf16.mxu1 %v645_v0  ;;  %523 = vmatpush3.bf16.msra.mxu0 %v522_v38 }
  0x4a   :  { %524 = vmatprep.subr.bf16.mxu0 %v645_v0 }
  0x4c   :  { %505 = vmatpush3.bf16.msra.mxu1 %v504_v20 }
  0x4d   :  { %506 = vmatprep.subr.bf16.mxu1 %v645_v0  ;;  %526 = vmatpush3.bf16.msra.mxu0 %v525_v41 }
  0x4e   :  { %527 = vmatprep.subr.bf16.mxu0 %v645_v0 }
  0x50   :  { %508 = vmatpush3.bf16.msra.mxu1 %v507_v23 }
  0x51   :  { %509 = vmatprep.subr.bf16.mxu1 %v645_v0  ;;  %529 = vmatpush3.bf16.msra.mxu0 %v528_v44 }
  0x52   :  { %530 = vmatprep.subr.bf16.mxu0 %v645_v0 }
  0x54   :  { %511 = vmatpush3.bf16.msra.mxu1 %v510_v26 }
  0x55   :  { %512 = vmatprep.subr.bf16.mxu1 %v645_v0  ;;  %532 = vmatpush3.bf16.msra.mxu0 %v531_v47 }
  0x56   :  { %533 = vmatprep.subr.bf16.mxu0 %v645_v0 }
  0x58   :  { %514 = vmatpush3.bf16.msra.mxu1 %v513_v29 }
  0x59   :  { %535 = vmatpush3.bf16.msra.mxu0 %v534_v50 }
  0x5a   :  { %536 = vmatprep.subr.bf16.mxu0 %v645_v0  ;;  %v371_v0 = vld [vmem:[%s879_s6] ss:$0 sm:$0xff]  ;;  %s614_s6 = scalar_lea.vmem %s359_s15, 128 }
  0x5b   :  { %p615_p10 = scmp.ne.s32.totalorder %s359_s15, %s614_s6  ;;  %p620_p12 = scmp.lt.s32.totalorder %s614_s6, %s614_s6 }
  0x5d   :  { %538 = vmatpush3.bf16.msra.mxu0 %v537_v58  ;;  %p621_p13 = por %p620_p12, %p619_p11 }
  0x5f   :  { %p622_p0 = pnand %p621_p13, %p615_p10 }
 0x111   :  { %v145_v52 = vpop.f32.mrb[0].mxu0 }
 0x112   :  { %v146_v53 = vadd.f32 %v368_v51, %v145_v52  ;;  %v417_v54 = vpop.f32.mrb[1].mxu0 }
 0x114   :  { %v149_v55 = vmax.f32 %v146_v53, 0.0 }
 0x116   :  { %451 = vmatmul.mubr.f32.vlgmr.msra.gmra.mrb[0].mxu1 %v149_v55 }
 0x1e9   :  { %v239_v60 = vpop.f32.mrb[0].mxu1 }
 0x1ea   :  { %v240_v61 = vadd.f32 %v370_v59, %v239_v60  ;;  %v452_v62 = vpop.f32.mrb[1].mxu1 }
 0x1ec   :  { %v243_v63 = vmax.f32 %v240_v61, 0.0 }
 0x1ee   :  { %486 = vmatmul.mubr.f32.vlgmr.msra.gmra.mrb[2].mxu0 %v243_v63 }
 0x2c1   :  { %v333_v1 = vpop.f32.mrb[2].mxu0 }
 0x2c2   :  { %v334_v2 = vadd.f32 %v371_v0, %v333_v1  ;;  %v487_v3 = vpop.f32.mrb[3].mxu0 }
 0x2c4   :  { %546 = vtanh.f32 %v334_v2 }
 0x2ce   :  { %v547_v5 = vpop.eup %546 }
 0x2cf   :  { %v343_v7 = vmul.f32 %v547_v5, %v372_v4 }
 0x2d1   :  { %v349_v8 = vadd.f32 %v373_v6, %v343_v7 }
 0x2d3   :  { %351 = vst.msk [vmem:[#allocation8] sm:$0xff] %vm350_vm2, %v349_v8 }
 0x2d4   :  { %625 = shalt.err (!%p622_p0)
}
 0x2d5   :  { %s626_s0 = scalar_lea.hbm %s881_s8, 128 }
 0x2d6   :  { %p627_p1 = scmp.ne.s32.totalorder %s881_s8, %s626_s0  ;;  %p630_p2 = scmp.lt.u32.totalorder %s626_s0, %s881_s8 }
 0x2d8   :  { %p632_p3 = pnand %p630_p2, %p627_p1 }
 0x2da   :  { %635 = shalt.err (!%p632_p3)
}
 0x2db   :  { %361 = dma.vmem_to_hbm [thread:$0]  %s359_s15, 128, %s881_s8, [#allocation4]  }
 0x2dc   :  { %640 = dma.done.wait [#allocation4], 128  }
 0x2dd   :  { %641 = vsyncadd [#allocation4], 4294967168 }
 0x2de   :  { %365 = vsyncpa [#allocation3], 1 }
 0x2df   :  { %366 = vsyncpa [#allocation6], 1 }
 0x2e0   :  { %367 = vsyncpa [#allocation4], 1 }

// kernel: tpu_custom_call.1
= control target key start
LH: loop header
LB: loop body
LE: loop exit
PB: predicated region body
PF: predicated region fallthrough
CT: control target
= control target key end

     0   :  { %13 = vsyncpa [#allocation3], 0  ;;  %s873_s0 = inlined_call_operand.hbm [shape: f32[8,16], index: 0, kind: input, shape index: {}]   ;;  %s874_s1 = inlined_call_operand.vmem [shape: f32[16,128], index: 1, kind: input, shape index: {}]   ;;  %s875_s2 = inlined_call_operand.hbm [shape: f32[1,128], index: 2, kind: input, shape index: {}]   ;;  %s876_s3 = inlined_call_operand.vmem [shape: f32[128,128], index: 3, kind: input, shape index: {}]   ;;  %s877_s4 = inlined_call_operand.hbm [shape: f32[1,128], index: 4, kind: input, shape index: {}]   ;;  %s878_s5 = inlined_call_operand.vmem [shape: f32[128,8], index: 5, kind: input, shape index: {}]   ;;  %s879_s6 = inlined_call_operand.vmem [shape: f32[1,8], index: 6, kind: input, shape index: {}]   ;;  %s880_s7 = inlined_call_operand.vmem [shape: f32[2,8], index: 7, kind: input, shape index: {}]   ;;  %s881_s8 = inlined_call_operand.hbm [shape: f32[8,8], index: 8, kind: output, shape index: {}]  }
   0x1   :  { %14 = vsyncpa [#allocation6], 0 }
   0x2   :  { %15 = vsyncpa [#allocation4], 0  ;;  %s642_s27 = smov [#allocation5]   ;;  %s643_s29 = smov [#allocation2]  }
   0x3   :  { %s34_s28 = sshll.u32 %s642_s27, 4  ;;  %s22_s30 = sshll.u32 %s643_s29, 4  ;;  %s35_s28 = int_to_ptr.vmem [resolvable:$true] %s34_s28  ;;  %s23_s30 = int_to_ptr.vmem [resolvable:$true] %s22_s30 }
   0x4   :  { %s548_s11 = scalar_lea.hbm %s875_s2, 16 }
   0x5   :  { %p549_p0 = scmp.ne.s32.totalorder %s875_s2, %s548_s11  ;;  %p552_p1 = scmp.lt.u32.totalorder %s548_s11, %s875_s2 }
   0x7   :  { %p554_p2 = pnand %p552_p1, %p549_p0 }
   0x9   :  { %557 = shalt.err (!%p554_p2)
}
   0xa   :  { %s558_s16 = scalar_lea.vmem %s35_s28, 16  ;;  %s562_s17 = scalar_lea.vmem %s35_s28, 32 }
   0xb   :  { %p559_p3 = scmp.ne.s32.totalorder %s35_s28, %s558_s16  ;;  %p563_p4 = scmp.lt.s32.totalorder %s35_s28, %s35_s28 }
   0xc   :  { %p564_p5 = scmp.lt.s32.totalorder %s562_s17, %s558_s16 }
   0xe   :  { %p565_p6 = por %p564_p5, %p563_p4 }
  0x10   :  { %p566_p7 = pnand %p565_p6, %p559_p3 }
  0x12   :  { %569 = shalt.err (!%p566_p7)
}
  0x13   :  { %37 = dma.hbm_to_vmem [thread:$0]  %s875_s2, 16, %s35_s28, [#allocation6]  }
  0x14   :  { %s570_s22 = scalar_lea.hbm %s873_s0, 128 }
  0x15   :  { %p571_p8 = scmp.ne.s32.totalorder %s873_s0, %s570_s22  ;;  %p574_p9 = scmp.lt.u32.totalorder %s570_s22, %s873_s0 }
  0x17   :  { %p576_p10 = pnand %p574_p9, %p571_p8 }
  0x19   :  { %579 = shalt.err (!%p576_p10)
}
  0x1a   :  { %s580_s27 = scalar_lea.vmem %s23_s30, 128  ;;  %p585_p12 = scmp.lt.s32.totalorder %s23_s30, %s23_s30 }
  0x1b   :  { %p581_p11 = scmp.ne.s32.totalorder %s23_s30, %s580_s27  ;;  %p586_p13 = scmp.lt.s32.totalorder %s580_s27, %s580_s27 }
  0x1d   :  { %p587_p0 = por %p586_p13, %p585_p12 }
  0x1f   :  { %p588_p1 = pnand %p587_p0, %p581_p11 }
  0x21   :  { %591 = shalt.err (!%p588_p1)
}
  0x22   :  { %25 = dma.hbm_to_vmem [thread:$0]  %s873_s0, 128, %s23_s30, [#allocation3]  }
  0x23   :  { %s644_s29 = smov [#allocation7]   ;;  %s592_s12 = scalar_lea.hbm %s877_s4, 16 }
  0x24   :  { %s46_s9 = sshll.u32 %s644_s29, 4  ;;  %p593_p2 = scmp.ne.s32.totalorder %s877_s4, %s592_s12  ;;  %s47_s9 = int_to_ptr.vmem [resolvable:$true] %s46_s9 }
  0x25   :  { %p596_p3 = scmp.lt.u32.totalorder %s592_s12, %s877_s4 }
  0x27   :  { %p598_p4 = pnand %p596_p3, %p593_p2 }
  0x29   :  { %601 = shalt.err (!%p598_p4)
}
  0x2a   :  { %s602_s17 = scalar_lea.vmem %s47_s9, 16  ;;  %s606_s0 = scalar_lea.vmem %s47_s9, 32 }
  0x2b   :  { %p603_p5 = scmp.ne.s32.totalorder %s47_s9, %s602_s17  ;;  %p607_p6 = scmp.lt.s32.totalorder %s47_s9, %s47_s9 }
  0x2c   :  { %p608_p7 = scmp.lt.s32.totalorder %s606_s0, %s602_s17 }
  0x2e   :  { %p609_p8 = por %p608_p7, %p607_p6 }
  0x30   :  { %p610_p9 = pnand %p609_p8, %p603_p5 }
  0x32   :  { %613 = shalt.err (!%p610_p9)
}
  0x33   :  { %49 = dma.hbm_to_vmem [thread:$0]  %s877_s4, 16, %s47_s9, [#allocation6]  }
  0x34   :  { %636 = dma.done.wait [#allocation3], 128  }
  0x35   :  { %637 = vsyncadd [#allocation3], 4294967168 }
  0x36   :  { %638 = dma.done.wait [#allocation6], 32  }
  0x37   :  { %639 = vsyncadd [#allocation6], 4294967264  ;;  %v645_v0 = vmov 0.0|0.0   ;;  %vm646_vm0 = vmmov 0   ;;  %v647_v1 = vmov 0.0   ;;  %v66_v2 = vld [vmem:[%s874_s1] sm:$0xff] }
  0x38   :  { %488 = vmatprep.subr.bf16.mxu0 %v645_v0  ;;  %415 = vmatprep.mubr.msk.f32.mxu0 %vm646_vm0, %v647_v1  ;;  %v67_v3 = vld [vmem:[%s874_s1 + $0x8] sm:$0xff]  ;;  %v150_v5 = vld [vmem:[%s876_s3] sm:$0xff]  ;;  %v152_v7 = vld [vmem:[%s876_s3 + $0x10] sm:$0xff]  ;;  %vm75_vm1 = vcmask 130048   ;;  %s648_s14 = smov [#allocation8]   ;;  %vm350_vm2 = vcmask 64512  }
  0x39   :  { %491 = vmatprep.subr.bf16.mxu1 %v645_v0  ;;  %450 = vmatprep.mubr.msk.f32.mxu1 %vm646_vm0, %v647_v1  ;;  %v489_v4 = vpack.c.bf16 %v67_v3, %v66_v2  ;;  %v151_v6 = vld [vmem:[%s876_s3 + $0x8] sm:$0xff]  ;;  %v153_v9 = vld [vmem:[%s876_s3 + $0x18] sm:$0xff]  ;;  %v65_v10 = vld [vmem:[#allocation2] sm:$0xff]  ;;  %s358_s15 = sshll.u32 %s648_s14, 4  ;;  %s359_s15 = int_to_ptr.vmem [resolvable:$true] %s358_s15 }
  0x3a   :  { %v492_v8 = vpack.c.bf16 %v151_v6, %v150_v5  ;;  %v495_v11 = vpack.c.bf16 %v153_v9, %v152_v7  ;;  %v154_v12 = vld [vmem:[%s876_s3 + $0x20] sm:$0xff]  ;;  %v155_v13 = vld [vmem:[%s876_s3 + $0x28] sm:$0xff]  ;;  %v156_v15 = vld [vmem:[%s876_s3 + $0x30] sm:$0xff]  ;;  %p619_p11 = scmp.lt.s32.totalorder %s359_s15, %s359_s15 }
  0x3b   :  { %490 = vmatpush3.bf16.msra.mxu0 %v489_v4  ;;  %v498_v14 = vpack.c.bf16 %v155_v13, %v154_v12  ;;  %v157_v16 = vld [vmem:[%s876_s3 + $0x38] sm:$0xff]  ;;  %v158_v18 = vld [vmem:[%s876_s3 + $0x40] sm:$0xff]  ;;  %v159_v19 = vld [vmem:[%s876_s3 + $0x48] sm:$0xff] }
  0x3c   :  { %493 = vmatpush3.bf16.msra.mxu1 %v492_v8  ;;  %515 = vmatprep.subr.bf16.mxu0 %v645_v0  ;;  %v501_v17 = vpack.c.bf16 %v157_v16, %v156_v15  ;;  %v504_v20 = vpack.c.bf16 %v159_v19, %v158_v18  ;;  %v160_v21 = vld [vmem:[%s876_s3 + $0x50] sm:$0xff]  ;;  %v161_v22 = vld [vmem:[%s876_s3 + $0x58] sm:$0xff]  ;;  %v162_v24 = vld [vmem:[%s876_s3 + $0x60] sm:$0xff] }
  0x3d   :  { %494 = vmatprep.subr.bf16.mxu1 %v645_v0  ;;  %v507_v23 = vpack.c.bf16 %v161_v22, %v160_v21  ;;  %v163_v25 = vld [vmem:[%s876_s3 + $0x68] sm:$0xff]  ;;  %v164_v27 = vld [vmem:[%s876_s3 + $0x70] sm:$0xff]  ;;  %v165_v28 = vld [vmem:[%s876_s3 + $0x78] sm:$0xff] }
  0x3e   :  { %416 = vmatmul.mubr.msk.f32.vlgmr.msra.gmra.mrb[0].mxu0 %vm75_vm1, %v65_v10  ;;  %v510_v26 = vpack.c.bf16 %v163_v25, %v162_v24  ;;  %v513_v29 = vpack.c.bf16 %v165_v28, %v164_v27  ;;  %v244_v30 = vld [vmem:[%s878_s5] sm:$0xff]  ;;  %v245_v31 = vld [vmem:[%s878_s5 + $0x8] sm:$0xff]  ;;  %v246_v32 = vld [vmem:[%s878_s5 + $0x10] sm:$0xff] }
  0x3f   :  { %485 = vmatprep.mubr.msk.f32.mxu0 %vm646_vm0, %v647_v1  ;;  %v516_v33 = vpack.c.bf16 %v245_v31, %v244_v30  ;;  %v247_v34 = vld [vmem:[%s878_s5 + $0x18] sm:$0xff]  ;;  %v248_v36 = vld [vmem:[%s878_s5 + $0x20] sm:$0xff]  ;;  %v249_v37 = vld [vmem:[%s878_s5 + $0x28] sm:$0xff] }
  0x40   :  { %496 = vmatpush3.bf16.msra.mxu1 %v495_v11  ;;  %v519_v35 = vpack.c.bf16 %v247_v34, %v246_v32  ;;  %v522_v38 = vpack.c.bf16 %v249_v37, %v248_v36  ;;  %v250_v39 = vld [vmem:[%s878_s5 + $0x30] sm:$0xff]  ;;  %v251_v40 = vld [vmem:[%s878_s5 + $0x38] sm:$0xff]  ;;  %v252_v42 = vld [vmem:[%s878_s5 + $0x40] sm:$0xff] }
  0x41   :  { %497 = vmatprep.subr.bf16.mxu1 %v645_v0  ;;  %517 = vmatpush3.bf16.msra.mxu0 %v516_v33  ;;  %v525_v41 = vpack.c.bf16 %v251_v40, %v250_v39  ;;  %v253_v43 = vld [vmem:[%s878_s5 + $0x48] sm:$0xff]  ;;  %v254_v45 = vld [vmem:[%s878_s5 + $0x50] sm:$0xff]  ;;  %v255_v46 = vld [vmem:[%s878_s5 + $0x58] sm:$0xff] }
  0x42   :  { %518 = vmatprep.subr.bf16.mxu0 %v645_v0  ;;  %v528_v44 = vpack.c.bf16 %v253_v43, %v252_v42  ;;  %v531_v47 = vpack.c.bf16 %v255_v46, %v254_v45  ;;  %v256_v48 = vld [vmem:[%s878_s5 + $0x60] sm:$0xff]  ;;  %v257_v49 = vld [vmem:[%s878_s5 + $0x68] sm:$0xff]  ;;  %v258_v56 = vld [vmem:[%s878_s5 + $0x70] sm:$0xff] }
  0x43   :  { %v534_v50 = vpack.c.bf16 %v257_v49, %v256_v48  ;;  %v368_v51 = vld [vmem:[#allocation5] ss:$0 sm:$0xff]  ;;  %v259_v57 = vld [vmem:[%s878_s5 + $0x78] sm:$0xff]  ;;  %v370_v59 = vld [vmem:[#allocation7] ss:$0 sm:$0xff] }
  0x44   :  { %499 = vmatpush3.bf16.msra.mxu1 %v498_v14  ;;  %v537_v58 = vpack.c.bf16 %v259_v57, %v258_v56  ;;  %v372_v4 = vld [vmem:[%s880_s7] ss:$0 sm:$0xff]  ;;  %v373_v6 = vld [vmem:[%s880_s7 + $0x1] ss:$0 sm:$0xff] }
  0x45   :  { %500 = vmatprep.subr.bf16.mxu1 %v645_v0  ;;  %520 = vmatpush3.bf16.msra.mxu0 %v519_v35 }
  0x46   :  { %521 = vmatprep.subr.bf16.mxu0 %v645_v0 }
  0x48   :  { %502 = vmatpush3.bf16.msra.mxu1 %v501_v17 }
  0x49   :  { %503 = vmatprep.subr.bf16.mxu1 %v645_v0  ;;  %523 = vmatpush3.bf16.msra.mxu0 %v522_v38 }
  0x4a   :  { %524 = vmatprep.subr.bf16.mxu0 %v645_v0 }
  0x4c   :  { %505 = vmatpush3.bf16.msra.mxu1 %v504_v20 }
  0x4d   :  { %506 = vmatprep.subr.bf16.mxu1 %v645_v0  ;;  %526 = vmatpush3.bf16.msra.mxu0 %v525_v41 }
  0x4e   :  { %527 = vmatprep.subr.bf16.mxu0 %v645_v0 }
  0x50   :  { %508 = vmatpush3.bf16.msra.mxu1 %v507_v23 }
  0x51   :  { %509 = vmatprep.subr.bf16.mxu1 %v645_v0  ;;  %529 = vmatpush3.bf16.msra.mxu0 %v528_v44 }
  0x52   :  { %530 = vmatprep.subr.bf16.mxu0 %v645_v0 }
  0x54   :  { %511 = vmatpush3.bf16.msra.mxu1 %v510_v26 }
  0x55   :  { %512 = vmatprep.subr.bf16.mxu1 %v645_v0  ;;  %532 = vmatpush3.bf16.msra.mxu0 %v531_v47 }
  0x56   :  { %533 = vmatprep.subr.bf16.mxu0 %v645_v0 }
  0x58   :  { %514 = vmatpush3.bf16.msra.mxu1 %v513_v29 }
  0x59   :  { %535 = vmatpush3.bf16.msra.mxu0 %v534_v50 }
  0x5a   :  { %536 = vmatprep.subr.bf16.mxu0 %v645_v0  ;;  %v371_v0 = vld [vmem:[%s879_s6] ss:$0 sm:$0xff]  ;;  %s614_s6 = scalar_lea.vmem %s359_s15, 128 }
  0x5b   :  { %p615_p10 = scmp.ne.s32.totalorder %s359_s15, %s614_s6  ;;  %p620_p12 = scmp.lt.s32.totalorder %s614_s6, %s614_s6 }
  0x5d   :  { %538 = vmatpush3.bf16.msra.mxu0 %v537_v58  ;;  %p621_p13 = por %p620_p12, %p619_p11 }
  0x5f   :  { %p622_p0 = pnand %p621_p13, %p615_p10 }
 0x111   :  { %v145_v52 = vpop.f32.mrb[0].mxu0 }
 0x112   :  { %v146_v53 = vadd.f32 %v368_v51, %v145_v52  ;;  %v417_v54 = vpop.f32.mrb[1].mxu0 }
 0x114   :  { %v149_v55 = vmax.f32 %v146_v53, 0.0 }
 0x116   :  { %451 = vmatmul.mubr.f32.vlgmr.msra.gmra.mrb[0].mxu1 %v149_v55 }
 0x1e9   :  { %v239_v60 = vpop.f32.mrb[0].mxu1 }
 0x1ea   :  { %v240_v61 = vadd.f32 %v370_v59, %v239_v60  ;;  %v452_v62 = vpop.f32.mrb[1].mxu1 }
 0x1ec   :  { %v243_v63 = vmax.f32 %v240_v61, 0.0 }
 0x1ee   :  { %486 = vmatmul.mubr.f32.vlgmr.msra.gmra.mrb[2].mxu0 %v243_v63 }
 0x2c1   :  { %v333_v1 = vpop.f32.mrb[2].mxu0 }
 0x2c2   :  { %v334_v2 = vadd.f32 %v371_v0, %v333_v1  ;;  %v487_v3 = vpop.f32.mrb[3].mxu0 }
 0x2c4   :  { %546 = vtanh.f32 %v334_v2 }
 0x2ce   :  { %v547_v5 = vpop.eup %546 }
 0x2cf   :  { %v343_v7 = vmul.f32 %v547_v5, %v372_v4 }
 0x2d1   :  { %v349_v8 = vadd.f32 %v373_v6, %v343_v7 }
 0x2d3   :  { %351 = vst.msk [vmem:[#allocation8] sm:$0xff] %vm350_vm2, %v349_v8 }
 0x2d4   :  { %625 = shalt.err (!%p622_p0)
}
 0x2d5   :  { %s626_s0 = scalar_lea.hbm %s881_s8, 128 }
 0x2d6   :  { %p627_p1 = scmp.ne.s32.totalorder %s881_s8, %s626_s0  ;;  %p630_p2 = scmp.lt.u32.totalorder %s626_s0, %s881_s8 }
 0x2d8   :  { %p632_p3 = pnand %p630_p2, %p627_p1 }
 0x2da   :  { %635 = shalt.err (!%p632_p3)
}
 0x2db   :  { %361 = dma.vmem_to_hbm [thread:$0]  %s359_s15, 128, %s881_s8, [#allocation4]  }
 0x2dc   :  { %640 = dma.done.wait [#allocation4], 128  }
 0x2dd   :  { %641 = vsyncadd [#allocation4], 4294967168 }
 0x2de   :  { %365 = vsyncpa [#allocation3], 1 }
 0x2df   :  { %366 = vsyncpa [#allocation6], 1 }
 0x2e0   :  { %367 = vsyncpa [#allocation4], 1 }

</bundles_post_ra>
